<compile_context>
chip_gen: v7x
topology: tpu7x:2x2x1
jax: 0.10.0
libtpu: 0.0.40
codegen_flags: <defaults>
</compile_context>

<pallas_src>
import jax
import jax.numpy as jnp
from jax import lax
from jax.experimental import pallas as pl
from jax.experimental.pallas import tpu as pltpu


# --------------------------------------------------------------------------
# helpers
# --------------------------------------------------------------------------
def _round_up(n, m):
    return ((n + m - 1) // m) * m


def _vmem_budget_bytes():
    # ~85% of per-core VMEM (64 MiB on v7x, 128 MiB on v5e/v6e).
    try:
        cap = pltpu.get_tpu_info().vmem_capacity_bytes
    except Exception:
        cap = 64 * 1024 * 1024
    return int(cap * 0.85)


def _pick_row_tile(n_pad):
    for t in (512, 256, 128):
        if n_pad % t == 0:
            return t
    return 128


def _pick_attn_tile(n_pad, fp, budget):
    for t in (512, 256, 128):
        if n_pad % t:
            continue
        need = (2 * t * n_pad * 2      # mask block (bf16), double-buffered
                + n_pad * fp * 2       # resident z (bf16), single-buffered
                + n_pad * 4            # el row (f32), single-buffered
                + 2 * t * 4            # er row blocks (f32)
                + 2 * t * fp * 2       # resb blocks (bf16)
                + 2 * t * fp * 4)      # out blocks (f32)
        if need <= budget:
            return t
    return 128


# --------------------------------------------------------------------------
# Stage 1: row-tiled fused feature transform + residual + attention logits
# --------------------------------------------------------------------------
def _proj_kernel(x_ref, wcat_ref, alr_ref, b_ref,
                 z_ref, resb_ref, el_ref, er_ref):
    fp = z_ref.shape[1]                                       # padded F_out

    # single 2*Fp-lane-wide matmul against [W | W_res] (bf16 in, f32 acc)
    zr = jnp.dot(x_ref[...], wcat_ref[...],
                 preferred_element_type=jnp.float32)          # (TM, 2*Fp)
    z = zr[:, :fp]                                            # (TM, Fp)

    z_ref[...] = z.astype(jnp.bfloat16)                       # bf16 for agg matmul
    resb_ref[...] = (zr[:, fp:] + b_ref[...]).astype(jnp.bfloat16)

    # both attention logits in ONE MXU dot ([a_l; a_r] (2,Fp) x z^T),
    # stored as lane-dense (1, TM) rows (no masked partial stores).
    logits = lax.dot_general(alr_ref[...], z, (((1,), (1,)), ((), ())),
                             preferred_element_type=jnp.float32)  # (2, TM)
    el_ref[...] = logits[0:1, :]
    er_ref[...] = logits[1:2, :]


# --------------------------------------------------------------------------
# Stage 2: row-tiled masked edge softmax + aggregation (+ residual/bias)
# --------------------------------------------------------------------------
def _attn_kernel(mask_ref, er_ref, resb_ref, z_ref, el_ref, o_ref):
    er = er_ref[...].T                                        # (1,TI)->(TI,1) tiny relayout
    e = er + el_ref[...]                                      # (TI,1)+(1,N)->(TI,N)
    e = jnp.maximum(e, 0.2 * e)                               # LeakyReLU(0.2)
    e = e + mask_ref[...].astype(jnp.float32)                 # additive 0/-1e30 mask (1 add)

    m = jnp.max(e, axis=-1, keepdims=True)
    p = jnp.exp(e - m)                                        # masked -> exact 0 (underflow)
    denom = jnp.sum(p, axis=-1, keepdims=True)
    alpha = p * pl.reciprocal(denom, approx=True)             # EUP vrcp

    out = jnp.dot(alpha.astype(jnp.bfloat16), z_ref[...],
                  preferred_element_type=jnp.float32)         # (TI, Fp)
    o_ref[...] = (out + resb_ref[...].astype(jnp.float32)).astype(o_ref.dtype)


# --------------------------------------------------------------------------
# wrapper
# --------------------------------------------------------------------------
def unit_gat_forward(x, adj, w, attn_l, attn_r, w_res, bias):
    N, f_in = x.shape
    f_out = w.shape[1]
    fp = _round_up(f_out, 128)                                # lane-dense padded width
    n_pad = _round_up(N, 128) if N <= 128 else _round_up(N, 256)
    pad_c = fp - f_out
    pad_r = n_pad - N

    pad_cols = lambda a: jnp.pad(a, ((0, 0), (0, pad_c))) if pad_c else a
    w_p, wres_p = pad_cols(w), pad_cols(w_res)
    b_p = pad_cols(bias).astype(jnp.float32)                  # (1, Fp)
    alr = jnp.concatenate([pad_cols(attn_l), pad_cols(attn_r)],
                          axis=0).astype(jnp.float32)         # (2, Fp)

    wcat = jnp.concatenate([w_p, wres_p], axis=1).astype(jnp.bfloat16)  # (F_in, 2*Fp)
    x_bf = x.astype(jnp.bfloat16)                             # bf16 HBM read in stage 1
    if pad_r:
        x_bf = jnp.pad(x_bf, ((0, pad_r), (0, 0)))
        adj = jnp.pad(adj, ((0, pad_r), (0, pad_r)))

    # additive mask bias: 0 on edges, -1e30 elsewhere; bf16 keeps the dominant
    # N x N operand at 2 bytes/elem (no in-kernel cmp/select needed).
    mask_bias = ((adj.astype(jnp.float32) - 1.0) * 1e30).astype(jnp.bfloat16)

    budget = _vmem_budget_bytes()

    # ---- stage 1 ----------------------------------------------------------
    tm = _pick_row_tile(n_pad)
    z_bf, resb, el, er = pl.pallas_call(
        _proj_kernel,
        out_shape=(jax.ShapeDtypeStruct((n_pad, fp), jnp.bfloat16),   # z
                   jax.ShapeDtypeStruct((n_pad, fp), jnp.bfloat16),   # residual + bias
                   jax.ShapeDtypeStruct((1, n_pad), jnp.float32),     # el (lane-dense row)
                   jax.ShapeDtypeStruct((1, n_pad), jnp.float32)),    # er (lane-dense row)
        grid=(n_pad // tm,),
        in_specs=[pl.BlockSpec((tm, f_in), lambda i: (i, 0)),         # x row block
                  pl.BlockSpec((f_in, 2 * fp), lambda i: (0, 0)),     # [W | W_res]
                  pl.BlockSpec((2, fp), lambda i: (0, 0)),            # [a_l; a_r]
                  pl.BlockSpec((1, fp), lambda i: (0, 0))],           # bias
        out_specs=(pl.BlockSpec((tm, fp), lambda i: (i, 0)),
                   pl.BlockSpec((tm, fp), lambda i: (i, 0)),
                   pl.BlockSpec((1, tm), lambda i: (0, i)),
                   pl.BlockSpec((1, tm), lambda i: (0, i))),
        compiler_params=pltpu.CompilerParams(
            dimension_semantics=("parallel",),
            vmem_limit_bytes=budget),
    )(x_bf, wcat, alr, b_p)

    # ---- stage 2 ----------------------------------------------------------
    ti = _pick_attn_tile(n_pad, fp, budget)

    def _stage2(single_buffer_invariants):
        if single_buffer_invariants:
            z_spec = pl.BlockSpec((n_pad, fp), lambda i: (0, 0),
                                  pipeline_mode=pl.Buffered(1))
            el_spec = pl.BlockSpec((1, n_pad), lambda i: (0, 0),
                                   pipeline_mode=pl.Buffered(1))
        else:
            z_spec = pl.BlockSpec((n_pad, fp), lambda i: (0, 0))
            el_spec = pl.BlockSpec((1, n_pad), lambda i: (0, 0))
        return pl.pallas_call(
            _attn_kernel,
            out_shape=jax.ShapeDtypeStruct((n_pad, fp), jnp.float32),
            grid=(n_pad // ti,),
            in_specs=[
                pl.BlockSpec((ti, n_pad), lambda i: (i, 0)),   # additive mask (dst rows)
                pl.BlockSpec((1, ti), lambda i: (0, i)),       # er for this dst block
                pl.BlockSpec((ti, fp), lambda i: (i, 0)),      # residual+bias rows
                z_spec,                                        # z (all sources, resident)
                el_spec,                                       # el (all sources)
            ],
            out_specs=pl.BlockSpec((ti, fp), lambda i: (i, 0)),
            compiler_params=pltpu.CompilerParams(
                dimension_semantics=("parallel",),
                vmem_limit_bytes=budget),
        )(mask_bias, er, resb, z_bf, el)

    try:
        out_p = _stage2(True)        # single-buffered grid-invariant operands
    except Exception:
        out_p = _stage2(False)       # fallback: default double-buffering

    return out_p[:N, :f_out]


# --------------------------------------------------------------------------
# Pure-JAX reference (f32 throughout)
# --------------------------------------------------------------------------
def _reference(x, adj, w, attn_l, attn_r, w_res, bias):
    z = x @ w
    el = jnp.sum(z * attn_l, axis=-1, keepdims=True)
    er = jnp.sum(z * attn_r, axis=-1, keepdims=True)
    e = er + el.T
    e = jnp.where(e > 0, e, 0.2 * e)
    e = jnp.where(adj > 0, e, -1e30)
    p = jnp.exp(e - jnp.max(e, axis=-1, keepdims=True))
    p = jnp.where(adj > 0, p, 0.0)
    alpha = p / jnp.sum(p, axis=-1, keepdims=True)
    return alpha @ z + x @ w_res + bias


if __name__ == "__main__":
    key = jax.random.PRNGKey(0)
    k_x, k_a, k_w, k_al, k_ar, k_wr = jax.random.split(key, 6)

    N = 128            # number of graph nodes
    in_channels = 32
    out_channels = 64

    # node features
    x = jax.random.normal(k_x, (N, in_channels), dtype=jnp.float32)

    # random sparse-ish adjacency with self-loops (row i = in-neighbors of node i)
    adj = jax.random.bernoulli(k_a, p=0.1, shape=(N, N)).astype(jnp.float32)
    adj = jnp.maximum(adj, jnp.eye(N, dtype=jnp.float32))

    # deterministic parameter init (xavier-ish gains), matching DGL GATConv shapes
    def xavier(k, shape):
        fan_in, fan_out = shape[0], shape[-1]
        lim = (6.0 / (fan_in + fan_out)) ** 0.5
        return jax.random.uniform(k, shape, jnp.float32, -lim, lim)

    w = xavier(k_w, (in_channels, out_channels))              # fc weight
    attn_l = xavier(k_al, (1, out_channels))                  # attn_l (heads=1)
    attn_r = xavier(k_ar, (1, out_channels))                  # attn_r (heads=1)
    w_res = xavier(k_wr, (in_channels, out_channels))         # residual projection
    bias = jnp.zeros((1, out_channels), dtype=jnp.float32)    # GATConv bias init: zeros

    y = unit_gat_forward(x, adj, w, attn_l, attn_r, w_res, bias)
    y = jax.block_until_ready(y)

    y_ref = _reference(x, adj, w, attn_l, attn_r, w_res, bias)
    assert y.shape == (N, out_channels)
    # bf16 matmul operands / bf16 z & residual carry + approx reciprocal
    assert jnp.allclose(y, y_ref, atol=5e-2, rtol=5e-2), "mismatch vs reference"

    print("KERNEL_OK")
</pallas_src>

<mosaic_0001>
module attributes {stable_mosaic.version = 11 : i64} {
  func.func @_proj_kernel(%arg0: i32, %arg1: memref<128x32xbf16, #tpu.memory_space<vmem>>, %arg2: memref<32x256xbf16, #tpu.memory_space<vmem>>, %arg3: memref<2x128xf32, #tpu.memory_space<vmem>>, %arg4: memref<1x128xf32, #tpu.memory_space<vmem>>, %arg5: memref<128x128xbf16, #tpu.memory_space<vmem>>, %arg6: memref<128x128xbf16, #tpu.memory_space<vmem>>, %arg7: memref<1x128xf32, #tpu.memory_space<vmem>>, %arg8: memref<1x128xf32, #tpu.memory_space<vmem>>) attributes {dimension_semantics = [#tpu.dimension_semantics<parallel>], iteration_bounds = array<i64: 1>, scalar_prefetch = 0 : i64, scratch_operands = 0 : i64, tpu.core_type = #tpu.core_type<tc>, window_params = [{transform_indices = @transform_0, window_bounds = array<i64: 128, 32>}, {pipeline_mode = #tpu.pipeline_mode<synchronous>, transform_indices = @transform_1, window_bounds = array<i64: 32, 256>}, {pipeline_mode = #tpu.pipeline_mode<synchronous>, transform_indices = @transform_2, window_bounds = array<i64: 2, 128>}, {pipeline_mode = #tpu.pipeline_mode<synchronous>, transform_indices = @transform_3, window_bounds = array<i64: 1, 128>}, {transform_indices = @transform_4, window_bounds = array<i64: 128, 128>}, {transform_indices = @transform_5, window_bounds = array<i64: 128, 128>}, {transform_indices = @transform_6, window_bounds = array<i64: 1, 128>}, {transform_indices = @transform_7, window_bounds = array<i64: 1, 128>}]} {
    %c0 = arith.constant 0 : index
    %c0_0 = arith.constant 0 : index
    %0 = vector.load %arg1[%c0, %c0_0] : memref<128x32xbf16, #tpu.memory_space<vmem>>, vector<128x32xbf16>
    %c0_1 = arith.constant 0 : index
    %c0_2 = arith.constant 0 : index
    %1 = vector.load %arg2[%c0_1, %c0_2] : memref<32x256xbf16, #tpu.memory_space<vmem>>, vector<32x256xbf16>
    %cst = arith.constant dense<0.000000e+00> : vector<128x256xf32>
    %2 = tpu.matmul %0, %1, %cst {dimension_numbers = #tpu.dot_dimension_numbers<[1], [0], [0], [1], [0, 0, 1, 1], [], []>} : vector<128x32xbf16>, vector<32x256xbf16>, vector<128x256xf32> -> vector<128x256xf32>
    %3 = vector.extract_strided_slice %2 {offsets = [0, 0], sizes = [128, 128], strides = [1, 1]} : vector<128x256xf32> to vector<128x128xf32>
    %4 = arith.truncf %3 : vector<128x128xf32> to vector<128x128xbf16>
    %c0_3 = arith.constant 0 : index
    %c0_4 = arith.constant 0 : index
    %5 = vector.load %arg5[%c0_3, %c0_4] : memref<128x128xbf16, #tpu.memory_space<vmem>>, vector<128x128xbf16>
    tpu.vector_store %arg5[%c0_3, %c0_4], %4 {strides = array<i32>} : memref<128x128xbf16, #tpu.memory_space<vmem>>, vector<128x128xbf16>,
    %6 = vector.extract_strided_slice %2 {offsets = [0, 128], sizes = [128, 128], strides = [1, 1]} : vector<128x256xf32> to vector<128x128xf32>
    %c0_5 = arith.constant 0 : index
    %c0_6 = arith.constant 0 : index
    %7 = vector.load %arg4[%c0_5, %c0_6] : memref<1x128xf32, #tpu.memory_space<vmem>>, vector<1x128xf32>
    %8 = vector.broadcast %7 : vector<1x128xf32> to vector<128x128xf32>
    %9 = arith.addf %6, %8 : vector<128x128xf32>
    %10 = arith.truncf %9 : vector<128x128xf32> to vector<128x128xbf16>
    %c0_7 = arith.constant 0 : index
    %c0_8 = arith.constant 0 : index
    %11 = vector.load %arg6[%c0_7, %c0_8] : memref<128x128xbf16, #tpu.memory_space<vmem>>, vector<128x128xbf16>
    tpu.vector_store %arg6[%c0_7, %c0_8], %10 {strides = array<i32>} : memref<128x128xbf16, #tpu.memory_space<vmem>>, vector<128x128xbf16>,
    %c0_9 = arith.constant 0 : index
    %c0_10 = arith.constant 0 : index
    %12 = vector.load %arg3[%c0_9, %c0_10] : memref<2x128xf32, #tpu.memory_space<vmem>>, vector<2x128xf32>
    %cst_11 = arith.constant dense<0.000000e+00> : vector<2x128xf32>
    %13 = tpu.matmul %12, %3, %cst_11 {dimension_numbers = #tpu.dot_dimension_numbers<[1], [1], [0], [0], [0, 0, 1, 0], [], []>} : vector<2x128xf32>, vector<128x128xf32>, vector<2x128xf32> -> vector<2x128xf32>
    %14 = vector.extract_strided_slice %13 {offsets = [0, 0], sizes = [1, 128], strides = [1, 1]} : vector<2x128xf32> to vector<1x128xf32>
    %c0_12 = arith.constant 0 : index
    %c0_13 = arith.constant 0 : index
    %15 = vector.load %arg7[%c0_12, %c0_13] : memref<1x128xf32, #tpu.memory_space<vmem>>, vector<1x128xf32>
    tpu.vector_store %arg7[%c0_12, %c0_13], %14 {strides = array<i32>} : memref<1x128xf32, #tpu.memory_space<vmem>>, vector<1x128xf32>,
    %16 = vector.extract_strided_slice %13 {offsets = [1, 0], sizes = [1, 128], strides = [1, 1]} : vector<2x128xf32> to vector<1x128xf32>
    %c0_14 = arith.constant 0 : index
    %c0_15 = arith.constant 0 : index
    %17 = vector.load %arg8[%c0_14, %c0_15] : memref<1x128xf32, #tpu.memory_space<vmem>>, vector<1x128xf32>
    tpu.vector_store %arg8[%c0_14, %c0_15], %16 {strides = array<i32>} : memref<1x128xf32, #tpu.memory_space<vmem>>, vector<1x128xf32>,
    return
  }
  func.func @transform_0(%arg0: i32) -> (i32, i32) {
    %c0_i32 = arith.constant 0 : i32
    %c0_i32_0 = arith.constant 0 : i32
    return %arg0, %c0_i32 : i32, i32
  }
  func.func @transform_1(%arg0: i32) -> (i32, i32) {
    %c0_i32 = arith.constant 0 : i32
    %c0_i32_0 = arith.constant 0 : i32
    %c0_i32_1 = arith.constant 0 : i32
    return %c0_i32, %c0_i32_0 : i32, i32
  }
  func.func @transform_2(%arg0: i32) -> (i32, i32) {
    %c0_i32 = arith.constant 0 : i32
    %c0_i32_0 = arith.constant 0 : i32
    %c0_i32_1 = arith.constant 0 : i32
    return %c0_i32, %c0_i32_0 : i32, i32
  }
  func.func @transform_3(%arg0: i32) -> (i32, i32) {
    %c0_i32 = arith.constant 0 : i32
    %c0_i32_0 = arith.constant 0 : i32
    %c0_i32_1 = arith.constant 0 : i32
    return %c0_i32, %c0_i32_0 : i32, i32
  }
  func.func @transform_4(%arg0: i32) -> (i32, i32) {
    %c0_i32 = arith.constant 0 : i32
    %c0_i32_0 = arith.constant 0 : i32
    return %arg0, %c0_i32 : i32, i32
  }
  func.func @transform_5(%arg0: i32) -> (i32, i32) {
    %c0_i32 = arith.constant 0 : i32
    %c0_i32_0 = arith.constant 0 : i32
    return %arg0, %c0_i32 : i32, i32
  }
  func.func @transform_6(%arg0: i32) -> (i32, i32) {
    %c0_i32 = arith.constant 0 : i32
    %c0_i32_0 = arith.constant 0 : i32
    return %c0_i32, %arg0 : i32, i32
  }
  func.func @transform_7(%arg0: i32) -> (i32, i32) {
    %c0_i32 = arith.constant 0 : i32
    %c0_i32_0 = arith.constant 0 : i32
    return %c0_i32, %arg0 : i32, i32
  }
}

</mosaic_0001>

<bundles_post_ra>
// kernel: tpu_custom_call.1
= control target key start
LH: loop header
LB: loop body
LE: loop exit
PB: predicated region body
PF: predicated region fallthrough
CT: control target
= control target key end

     0   :  { %13 = vsyncpa [#allocation3], 0  ;;  %s1113_s0 = inlined_call_operand.vmem [shape: bf16[128,32], index: 0, kind: input, shape index: {}]   ;;  %s1114_s1 = inlined_call_operand.vmem [shape: bf16[32,256], index: 1, kind: input, shape index: {}]   ;;  %s1115_s2 = inlined_call_operand.vmem [shape: f32[2,128], index: 2, kind: input, shape index: {}]   ;;  %s1116_s3 = inlined_call_operand.vmem [shape: f32[1,128], index: 3, kind: input, shape index: {}]   ;;  %s1117_s4 = inlined_call_operand.hbm [shape: bf16[128,128], index: 4, kind: output, shape index: {0}]   ;;  %s1118_s5 = inlined_call_operand.hbm [shape: bf16[128,128], index: 5, kind: output, shape index: {1}]   ;;  %s1119_s6 = inlined_call_operand.hbm [shape: f32[1,128], index: 6, kind: output, shape index: {2}]   ;;  %s1120_s7 = inlined_call_operand.hbm [shape: f32[1,128], index: 7, kind: output, shape index: {3}]  }
   0x1   :  { %14 = vsyncpa [#allocation5], 0  ;;  %v823_v0 = vld [vmem:[%s1114_s1 + $0x4] ss:$8 sps:$4 sm:$0xff]   ;;  %v825_v1 = vld [vmem:[%s1114_s1] ss:$8 sps:$4 sm:$0xff]  }
   0x2   :  { %v931_v2 = vmov 0   ;;  %130 = vmatprep.subr.bf16.mxu0 %v823_v0  ;;  %v826_v3 = vld [vmem:[%s1114_s1 + $0x14] ss:$8 sps:$4 sm:$0xff]   ;;  %v828_v4 = vld [vmem:[%s1114_s1 + $0x10] ss:$8 sps:$4 sm:$0xff]   ;;  %v829_v5 = vld [vmem:[%s1113_s0] sm:$0xff]  }
   0x3   :  { %162 = vmatprep.mubr.bf16.mxu0 %v931_v2  ;;  %131 = vmatpush1.bf16.msra.mxu0 %v825_v1  ;;  %vm105_vm0 = vcmask 261120  }
   0x4   :  { %132 = vmatprep.subr.bf16.mxu0 %v826_v3 }
   0x7   :  { %133 = vmatpush1.bf16.msra.mxu0 %v828_v4 }
   0xa   :  { %570 = vmatmul.mubr.msk.bf16.vlgmr.msra.gmra.mrb[0].mxu0 %vm105_vm0, %v829_v5 }
   0xb   :  { %15 = vsyncpa [#allocation8], 0  ;;  %172 = vmatprep.mubr.bf16.mxu0 %v931_v2  ;;  %v830_v6 = vld [vmem:[%s1113_s0 + $0x8] sm:$0xff]   ;;  %v831_v7 = vld [vmem:[%s1113_s0 + $0x10] sm:$0xff]   ;;  %v932_v13 = vmov 0.0|0.0   ;;  %vm933_vm1 = vmmov 0  }
   0xc   :  { %v832_v8 = vld [vmem:[%s1113_s0 + $0x18] sm:$0xff]   ;;  %v833_v9 = vld [vmem:[%s1113_s0 + $0x20] sm:$0xff]   ;;  %v834_v10 = vld [vmem:[%s1113_s0 + $0x28] sm:$0xff]   ;;  %789 = vmatprep.subr.bf16.mxu1 %v932_v13  ;;  %v934_v14 = vmov 0.0   ;;  %s935_s26 = smov [#allocation4]   ;;  %s936_s28 = smov [#allocation2]  }
   0xd   :  { %v835_v11 = vld [vmem:[%s1113_s0 + $0x30] sm:$0xff]   ;;  %v836_v12 = vld [vmem:[%s1113_s0 + $0x38] sm:$0xff]   ;;  %786 = vmatprep.mubr.msk.f32.mxu1 %vm933_vm1, %v934_v14  ;;  %v1029_v17 = vld [vmem:[%s1116_s3] ss:$0 sm:$0xff]  ;;  %s516_s27 = sshll.u32 %s935_s26, 4  ;;  %s504_s29 = sshll.u32 %s936_s28, 4  ;;  %s517_s27 = int_to_ptr.vmem [resolvable:$true] %s516_s27  ;;  %s505_s29 = int_to_ptr.vmem [resolvable:$true] %s504_s29 }
   0xe   :  { %s837_s30 = scalar_lea.vmem %s517_s27, 1024  ;;  %p842_p1 = scmp.lt.s32.totalorder %s517_s27, %s517_s27 }
   0xf   :  { %p838_p0 = scmp.ne.s32.totalorder %s517_s27, %s837_s30  ;;  %p843_p2 = scmp.lt.s32.totalorder %s837_s30, %s837_s30 }
  0x11   :  { %p844_p3 = por %p843_p2, %p842_p1 }
  0x12   :  { %571 = vmatmul.mubr.msk.bf16.gmra.mrb[4].mxu0 %vm105_vm0, %v830_v6 }
  0x13   :  { %182 = vmatprep.mubr.bf16.mxu0 %v931_v2  ;;  %p845_p4 = pnand %p844_p3, %p838_p0 }
  0x1a   :  { %572 = vmatmul.mubr.msk.bf16.gmra.mrb[8].mxu0 %vm105_vm0, %v831_v7 }
  0x1b   :  { %192 = vmatprep.mubr.bf16.mxu0 %v931_v2 }
  0x22   :  { %573 = vmatmul.mubr.msk.bf16.gmra.mrb[12].mxu0 %vm105_vm0, %v832_v8 }
  0x23   :  { %202 = vmatprep.mubr.bf16.mxu0 %v931_v2 }
  0x2a   :  { %574 = vmatmul.mubr.msk.bf16.gmra.mrb[16].mxu0 %vm105_vm0, %v833_v9 }
  0x2b   :  { %212 = vmatprep.mubr.bf16.mxu0 %v931_v2 }
  0x32   :  { %575 = vmatmul.mubr.msk.bf16.gmra.mrb[20].mxu0 %vm105_vm0, %v834_v10 }
  0x33   :  { %222 = vmatprep.mubr.bf16.mxu0 %v931_v2 }
  0x3a   :  { %576 = vmatmul.mubr.msk.bf16.gmra.mrb[24].mxu0 %vm105_vm0, %v835_v11 }
  0x3b   :  { %232 = vmatprep.mubr.bf16.mxu0 %v931_v2 }
  0x42   :  { %577 = vmatmul.mubr.msk.bf16.gmra.mrb[28].mxu0 %vm105_vm0, %v836_v12 }
  0xdd   :  { %v164_v15 = vpop.f32.mrb[0].mxu0 }
  0xde   :  { %v166_v16 = vpop.f32.mrb[1].mxu0 }
  0xdf   :  { %v168_v18 = vpop.f32.mrb[2].mxu0  ;;  %v330_v21 = vadd.f32 %v1029_v17, %v166_v16 }
  0xe0   :  { %v646_v19 = vpack.c.bf16 %v168_v18, %v164_v15  ;;  %v170_v20 = vpop.f32.mrb[3].mxu0  ;;  %v426_v18 = vld [vmem:[%s1115_s2] sm:$0x3] }
  0xe1   :  { %v331_v22 = vadd.f32 %v1029_v17, %v170_v20 }
  0xe2   :  { %647 = vst [vmem:[#allocation2] sm:$0xff] %v646_v19   ;;  %791 = vmatpush3.bf16.xpose.msra.mxu1 %v646_v19 }
  0xe3   :  { %v686_v23 = vpack.c.bf16 %v331_v22, %v330_v21  ;;  %792 = vmatprep.subr.bf16.mxu1 %v932_v13 }
  0xe5   :  { %687 = vst [vmem:[#allocation4] sm:$0xff] %v686_v23   ;;  %v174_v24 = vpop.f32.mrb[4].mxu0 }
  0xe6   :  { %v176_v25 = vpop.f32.mrb[5].mxu0 }
  0xe7   :  { %v178_v26 = vpop.f32.mrb[6].mxu0  ;;  %v332_v29 = vadd.f32 %v1029_v17, %v176_v25 }
  0xe8   :  { %v651_v27 = vpack.c.bf16 %v178_v26, %v174_v24  ;;  %v180_v28 = vpop.f32.mrb[7].mxu0 }
  0xe9   :  { %v333_v30 = vadd.f32 %v1029_v17, %v180_v28 }
  0xea   :  { %723 = vst [vmem:[#allocation2 + $0x8] sm:$0xff] %v651_v27   ;;  %794 = vmatpush3.bf16.xpose.msra.mxu1 %v651_v27 }
  0xeb   :  { %v691_v31 = vpack.c.bf16 %v333_v30, %v332_v29  ;;  %795 = vmatprep.subr.bf16.mxu1 %v932_v13 }
  0xed   :  { %730 = vst [vmem:[#allocation4 + $0x8] sm:$0xff] %v691_v31   ;;  %v184_v32 = vpop.f32.mrb[8].mxu0 }
  0xee   :  { %v186_v33 = vpop.f32.mrb[9].mxu0 }
  0xef   :  { %v188_v34 = vpop.f32.mrb[10].mxu0  ;;  %v334_v37 = vadd.f32 %v1029_v17, %v186_v33 }
  0xf0   :  { %v656_v35 = vpack.c.bf16 %v188_v34, %v184_v32  ;;  %v190_v36 = vpop.f32.mrb[11].mxu0 }
  0xf1   :  { %v335_v38 = vadd.f32 %v1029_v17, %v190_v36 }
  0xf2   :  { %724 = vst [vmem:[#allocation2 + $0x10] sm:$0xff] %v656_v35   ;;  %797 = vmatpush3.bf16.xpose.msra.mxu1 %v656_v35 }
  0xf3   :  { %v696_v39 = vpack.c.bf16 %v335_v38, %v334_v37  ;;  %798 = vmatprep.subr.bf16.mxu1 %v932_v13 }
  0xf5   :  { %731 = vst [vmem:[#allocation4 + $0x10] sm:$0xff] %v696_v39   ;;  %v194_v40 = vpop.f32.mrb[12].mxu0 }
  0xf6   :  { %v196_v41 = vpop.f32.mrb[13].mxu0 }
  0xf7   :  { %v198_v42 = vpop.f32.mrb[14].mxu0  ;;  %v336_v45 = vadd.f32 %v1029_v17, %v196_v41 }
  0xf8   :  { %v661_v43 = vpack.c.bf16 %v198_v42, %v194_v40  ;;  %v200_v44 = vpop.f32.mrb[15].mxu0 }
  0xf9   :  { %v337_v46 = vadd.f32 %v1029_v17, %v200_v44 }
  0xfa   :  { %725 = vst [vmem:[#allocation2 + $0x18] sm:$0xff] %v661_v43   ;;  %800 = vmatpush3.bf16.xpose.msra.mxu1 %v661_v43 }
  0xfb   :  { %v701_v47 = vpack.c.bf16 %v337_v46, %v336_v45  ;;  %801 = vmatprep.subr.bf16.mxu1 %v932_v13 }
  0xfd   :  { %732 = vst [vmem:[#allocation4 + $0x18] sm:$0xff] %v701_v47   ;;  %v204_v48 = vpop.f32.mrb[16].mxu0 }
  0xfe   :  { %v206_v49 = vpop.f32.mrb[17].mxu0 }
  0xff   :  { %v208_v50 = vpop.f32.mrb[18].mxu0  ;;  %v338_v53 = vadd.f32 %v1029_v17, %v206_v49 }
 0x100   :  { %v666_v51 = vpack.c.bf16 %v208_v50, %v204_v48  ;;  %v210_v52 = vpop.f32.mrb[19].mxu0 }
 0x101   :  { %v339_v54 = vadd.f32 %v1029_v17, %v210_v52 }
 0x102   :  { %726 = vst [vmem:[#allocation2 + $0x20] sm:$0xff] %v666_v51   ;;  %803 = vmatpush3.bf16.xpose.msra.mxu1 %v666_v51 }
 0x103   :  { %v706_v55 = vpack.c.bf16 %v339_v54, %v338_v53  ;;  %804 = vmatprep.subr.bf16.mxu1 %v932_v13 }
 0x105   :  { %733 = vst [vmem:[#allocation4 + $0x20] sm:$0xff] %v706_v55   ;;  %v214_v56 = vpop.f32.mrb[20].mxu0 }
 0x106   :  { %v216_v57 = vpop.f32.mrb[21].mxu0 }
 0x107   :  { %v218_v58 = vpop.f32.mrb[22].mxu0  ;;  %v340_v61 = vadd.f32 %v1029_v17, %v216_v57 }
 0x108   :  { %v671_v59 = vpack.c.bf16 %v218_v58, %v214_v56  ;;  %v220_v60 = vpop.f32.mrb[23].mxu0 }
 0x109   :  { %v341_v62 = vadd.f32 %v1029_v17, %v220_v60 }
 0x10a   :  { %727 = vst [vmem:[#allocation2 + $0x28] sm:$0xff] %v671_v59   ;;  %806 = vmatpush3.bf16.xpose.msra.mxu1 %v671_v59 }
 0x10b   :  { %v711_v63 = vpack.c.bf16 %v341_v62, %v340_v61  ;;  %807 = vmatprep.subr.bf16.mxu1 %v932_v13 }
 0x10d   :  { %734 = vst [vmem:[#allocation4 + $0x28] sm:$0xff] %v711_v63   ;;  %v224_v0 = vpop.f32.mrb[24].mxu0 }
 0x10e   :  { %v226_v1 = vpop.f32.mrb[25].mxu0 }
 0x10f   :  { %v228_v2 = vpop.f32.mrb[26].mxu0  ;;  %v342_v5 = vadd.f32 %v1029_v17, %v226_v1 }
 0x110   :  { %v676_v3 = vpack.c.bf16 %v228_v2, %v224_v0  ;;  %v230_v4 = vpop.f32.mrb[27].mxu0 }
 0x111   :  { %v343_v6 = vadd.f32 %v1029_v17, %v230_v4 }
 0x112   :  { %728 = vst [vmem:[#allocation2 + $0x30] sm:$0xff] %v676_v3   ;;  %809 = vmatpush3.bf16.xpose.msra.mxu1 %v676_v3 }
 0x113   :  { %v716_v7 = vpack.c.bf16 %v343_v6, %v342_v5  ;;  %810 = vmatprep.subr.bf16.mxu1 %v932_v13 }
 0x115   :  { %735 = vst [vmem:[#allocation4 + $0x30] sm:$0xff] %v716_v7   ;;  %v234_v8 = vpop.f32.mrb[28].mxu0 }
 0x116   :  { %v236_v9 = vpop.f32.mrb[29].mxu0 }
 0x117   :  { %v238_v10 = vpop.f32.mrb[30].mxu0  ;;  %v344_v14 = vadd.f32 %v1029_v17, %v236_v9 }
 0x118   :  { %v681_v11 = vpack.c.bf16 %v238_v10, %v234_v8  ;;  %v240_v12 = vpop.f32.mrb[31].mxu0 }
 0x119   :  { %v345_v15 = vadd.f32 %v1029_v17, %v240_v12 }
 0x11a   :  { %729 = vst [vmem:[#allocation2 + $0x38] sm:$0xff] %v681_v11   ;;  %812 = vmatpush3.bf16.xpose.msra.mxu1 %v681_v11 }
 0x11b   :  { %v721_v16 = vpack.c.bf16 %v345_v15, %v344_v14 }
 0x11d   :  { %736 = vst [vmem:[#allocation4 + $0x38] sm:$0xff] %v721_v16  }
 0x121   :  { %787 = vmatmul.mubr.f32.vlgmr.msra.gmra.mrb[0].mxu1 %v426_v18 }
 0x122   :  { %848 = shalt.err (!%p845_p4)
}
 0x123   :  { %s849_s10 = scalar_lea.hbm %s1118_s5, 1024 }
 0x124   :  { %p850_p5 = scmp.ne.s32.totalorder %s1118_s5, %s849_s10  ;;  %p853_p6 = scmp.lt.u32.totalorder %s849_s10, %s1118_s5 }
 0x126   :  { %p855_p7 = pnand %p853_p6, %p850_p5 }
 0x128   :  { %858 = shalt.err (!%p855_p7)
}
 0x129   :  { %s937_s1 = smov 64   ;;  %s938_s14 = smov 4  }
 0x12a   :  { %522 = dma.vmem_to_hbm [thread:$0]  %s517_s27, 1024, %s1118_s5, [#allocation5], %s937_s1, %s937_s1, %s938_s14  }
 0x12b   :  { %s859_s17 = scalar_lea.vmem %s505_s29, 1024  ;;  %p864_p9 = scmp.lt.s32.totalorder %s505_s29, %s505_s29 }
 0x12c   :  { %p860_p8 = scmp.ne.s32.totalorder %s505_s29, %s859_s17  ;;  %p865_p10 = scmp.lt.s32.totalorder %s859_s17, %s859_s17 }
 0x12e   :  { %p866_p11 = por %p865_p10, %p864_p9 }
 0x130   :  { %p867_p12 = pnand %p866_p11, %p860_p8 }
 0x132   :  { %870 = shalt.err (!%p867_p12)
}
 0x133   :  { %s871_s20 = scalar_lea.hbm %s1117_s4, 1024 }
 0x134   :  { %p872_p13 = scmp.ne.s32.totalorder %s1117_s4, %s871_s20  ;;  %p875_p0 = scmp.lt.u32.totalorder %s871_s20, %s1117_s4 }
 0x136   :  { %p877_p1 = pnand %p875_p0, %p872_p13 }
 0x138   :  { %880 = shalt.err (!%p877_p1)
}
 0x139   :  { %510 = dma.vmem_to_hbm [thread:$0]  %s505_s29, 1024, %s1117_s4, [#allocation3], %s937_s1, %s937_s1, %s938_s14  }
 0x13a   :  { %s939_s0 = smov [#allocation6]   ;;  %s940_s26 = smov [#allocation7]  }
 0x13b   :  { %s529_s3 = sshll.u32 %s939_s0, 4  ;;  %s539_s27 = sshll.u32 %s940_s26, 4  ;;  %s530_s3 = int_to_ptr.vmem [resolvable:$true] %s529_s3  ;;  %s1081_s27 = int_to_ptr.vmem [resolvable:$true] %s539_s27 }
 0x13c   :  { %s881_s28 = scalar_lea.vmem %s530_s3, 16  ;;  %s885_s30 = scalar_lea.vmem %s530_s3, 32 }
 0x13d   :  { %p882_p2 = scmp.ne.s32.totalorder %s530_s3, %s881_s28  ;;  %p886_p3 = scmp.lt.s32.totalorder %s530_s3, %s530_s3 }
 0x13e   :  { %p887_p4 = scmp.lt.s32.totalorder %s885_s30, %s881_s28 }
 0x140   :  { %p888_p5 = por %p887_p4, %p886_p3 }
 0x142   :  { %p889_p6 = pnand %p888_p5, %p882_p2 }
 0x1f4   :  { %v493_v13 = vpop.f32.mrb[0].mxu1 }
 0x1f5   :  { %497 = vst [vmem:[#allocation6] sm:$0x1] %v493_v13  ;;  %498 = vst [vmem:[#allocation7 - $0x1] sm:$0x2] %v493_v13  ;;  %v788_v17 = vpop.f32.mrb[1].mxu1 }
 0x1f6   :  { %892 = shalt.err (!%p889_p6)
}
 0x1f7   :  { %s893_s8 = scalar_lea.hbm %s1119_s6, 16 }
 0x1f8   :  { %p894_p7 = scmp.ne.s32.totalorder %s1119_s6, %s893_s8  ;;  %p897_p8 = scmp.lt.u32.totalorder %s893_s8, %s1119_s6 }
 0x1fa   :  { %p899_p9 = pnand %p897_p8, %p894_p7 }
 0x1fc   :  { %902 = shalt.err (!%p899_p9)
}
 0x1fd   :  { %532 = dma.vmem_to_hbm [thread:$0]  %s530_s3, 16, %s1119_s6, [#allocation5]  }
 0x1fe   :  { %s903_s1 = scalar_lea.vmem %s1081_s27, 16  ;;  %s907_s14 = scalar_lea.vmem %s1081_s27, 32 }
 0x1ff   :  { %p904_p10 = scmp.ne.s32.totalorder %s1081_s27, %s903_s1  ;;  %p908_p11 = scmp.lt.s32.totalorder %s1081_s27, %s1081_s27 }
 0x200   :  { %p909_p12 = scmp.lt.s32.totalorder %s907_s14, %s903_s1 }
 0x202   :  { %p910_p13 = por %p909_p12, %p908_p11 }
 0x204   :  { %p911_p0 = pnand %p910_p13, %p904_p10 }
 0x206   :  { %914 = shalt.err (!%p911_p0)
}
 0x207   :  { %s915_s17 = scalar_lea.hbm %s1120_s7, 16 }
 0x208   :  { %p916_p1 = scmp.ne.s32.totalorder %s1120_s7, %s915_s17  ;;  %p919_p2 = scmp.lt.u32.totalorder %s915_s17, %s1120_s7 }
 0x20a   :  { %p921_p3 = pnand %p919_p2, %p916_p1 }
 0x20c   :  { %924 = shalt.err (!%p921_p3)
}
 0x20d   :  { %542 = dma.vmem_to_hbm [thread:$0]  %s1081_s27, 16, %s1120_s7, [#allocation8]  }
 0x20e   :  { %925 = dma.done.wait [#allocation3], 1024  }
 0x20f   :  { %926 = vsyncadd [#allocation3], 4294966272 }
 0x210   :  { %927 = dma.done.wait [#allocation5], 1040  }
 0x211   :  { %928 = vsyncadd [#allocation5], 4294966256 }
 0x212   :  { %929 = dma.done.wait [#allocation8], 16  }
 0x213   :  { %930 = vsyncadd [#allocation8], 4294967280 }
 0x214   :  { %555 = vsyncpa [#allocation3], 1 }
 0x215   :  { %556 = vsyncpa [#allocation5], 1 }
 0x216   :  { %557 = vsyncpa [#allocation8], 1 }

</bundles_post_ra>
